<compile_context>
chip_gen: v6e
topology: v6e:2x2x1
jax: 0.10.0
libtpu: 0.0.40
codegen_flags: <defaults>
</compile_context>

<pallas_src>
import jax
import jax.numpy as jnp
from jax.experimental import pallas as pl
from jax.experimental.pallas import tpu as pltpu


# ----------------------------------------------------------------------------
# Kernels
# ----------------------------------------------------------------------------
def _bidir_lstm_layer_kernel(xf_ref, xb_ref,
                             w_ih_f_ref, w_hh_f_ref, b_f_ref,
                             w_ih_b_ref, w_hh_b_ref, b_b_ref,
                             yf_ref, yb_ref,
                             hf_sc, cf_sc, hb_sc, cb_sc):
    """One time step of a bidirectional LSTM layer (fwd + bwd directions)."""
    t = pl.program_id(0)

    @pl.when(t == 0)
    def _():
        hf_sc[...] = jnp.zeros_like(hf_sc)
        cf_sc[...] = jnp.zeros_like(cf_sc)
        hb_sc[...] = jnp.zeros_like(hb_sc)
        cb_sc[...] = jnp.zeros_like(cb_sc)

    H = hf_sc.shape[-1]

    def cell(x_t, w_ih, w_hh, b, h_sc, c_sc):
        # Single fused [B, 4H] gate matmul (lane-dense, 4H = 128 here).
        gates = (jnp.dot(x_t, w_ih, preferred_element_type=jnp.float32)
                 + jnp.dot(h_sc[...], w_hh, preferred_element_type=jnp.float32)
                 + b)
        i_g = jax.nn.sigmoid(gates[:, 0 * H:1 * H])
        f_g = jax.nn.sigmoid(gates[:, 1 * H:2 * H])
        g_g = jnp.tanh(gates[:, 2 * H:3 * H])
        o_g = jax.nn.sigmoid(gates[:, 3 * H:4 * H])
        c_new = f_g * c_sc[...] + i_g * g_g
        h_new = o_g * jnp.tanh(c_new)
        c_sc[...] = c_new
        h_sc[...] = h_new
        return h_new

    h_f = cell(xf_ref[0].astype(jnp.float32),
               w_ih_f_ref[...].astype(jnp.float32),
               w_hh_f_ref[...].astype(jnp.float32),
               b_f_ref[...].astype(jnp.float32), hf_sc, cf_sc)
    h_b = cell(xb_ref[0].astype(jnp.float32),
               w_ih_b_ref[...].astype(jnp.float32),
               w_hh_b_ref[...].astype(jnp.float32),
               b_b_ref[...].astype(jnp.float32), hb_sc, cb_sc)

    yf_ref[0] = h_f.astype(yf_ref.dtype)
    yb_ref[0] = h_b.astype(yb_ref.dtype)


def _head_kernel(h_ref, w_ref, b_ref, o_ref):
    """Final Linear(2H -> target_size) on the concatenated last hidden state."""
    h = h_ref[...].astype(jnp.float32)              # [B, 2H]
    w = w_ref[...].astype(jnp.float32)              # [2H, O]
    if w.shape[1] == 1:
        # N=1 matmul done as VPU multiply + lane reduction (keeps MXU free).
        out = jnp.sum(h * w[:, 0][None, :], axis=-1, keepdims=True)
    else:
        out = jnp.dot(h, w, preferred_element_type=jnp.float32)
    o_ref[...] = (out + b_ref[...].astype(jnp.float32)).astype(o_ref.dtype)


# ----------------------------------------------------------------------------
# Wrappers
# ----------------------------------------------------------------------------
def _run_bidir_layer(x_tmajor, lp):
    """x_tmajor: [T, B, I] time-major input. Returns (y_fwd, y_bwd), each [T, B, H]."""
    T, B, I = x_tmajor.shape
    H = lp["w_hh_f"].shape[0]
    G = 4 * H

    in_specs = [
        pl.BlockSpec((1, B, I), lambda t: (t, 0, 0)),           # x for forward dir
        pl.BlockSpec((1, B, I), lambda t: (T - 1 - t, 0, 0)),   # x for backward dir
        pl.BlockSpec((I, G), lambda t: (0, 0)),                 # w_ih fwd (resident)
        pl.BlockSpec((H, G), lambda t: (0, 0)),                 # w_hh fwd
        pl.BlockSpec((1, G), lambda t: (0, 0)),                 # bias fwd
        pl.BlockSpec((I, G), lambda t: (0, 0)),                 # w_ih bwd
        pl.BlockSpec((H, G), lambda t: (0, 0)),                 # w_hh bwd
        pl.BlockSpec((1, G), lambda t: (0, 0)),                 # bias bwd
    ]
    out_specs = (
        pl.BlockSpec((1, B, H), lambda t: (t, 0, 0)),           # y fwd, time-aligned
        pl.BlockSpec((1, B, H), lambda t: (T - 1 - t, 0, 0)),   # y bwd, time-aligned
    )
    out_shape = (
        jax.ShapeDtypeStruct((T, B, H), jnp.float32),
        jax.ShapeDtypeStruct((T, B, H), jnp.float32),
    )

    y_f, y_b = pl.pallas_call(
        _bidir_lstm_layer_kernel,
        grid=(T,),
        in_specs=in_specs,
        out_specs=out_specs,
        out_shape=out_shape,
        scratch_shapes=[pltpu.VMEM((B, H), jnp.float32)] * 4,   # h_f, c_f, h_b, c_b
        compiler_params=pltpu.CompilerParams(
            dimension_semantics=("arbitrary",)),                # recurrence over T
    )(x_tmajor, x_tmajor,
      lp["w_ih_f"], lp["w_hh_f"], lp["b_f"],
      lp["w_ih_b"], lp["w_hh_b"], lp["b_b"])
    return y_f, y_b


def _linear_head(h_cat, w_lin, b_lin):
    B = h_cat.shape[0]
    O = w_lin.shape[1]
    return pl.pallas_call(
        _head_kernel,
        out_shape=jax.ShapeDtypeStruct((B, O), jnp.float32),
        in_specs=[pl.BlockSpec(memory_space=pltpu.MemorySpace.VMEM)] * 3,
        out_specs=pl.BlockSpec(memory_space=pltpu.MemorySpace.VMEM),
    )(h_cat, w_lin, b_lin)


def lstm_model_forward(x, lstm_params, w_lin, b_lin):
    """Forward pass of the PyTorch LSTM module.

    x: [B, T, input_dim] (batch_first). Returns logits [B, target_size].
    """
    xt = jnp.transpose(x, (1, 0, 2)).astype(jnp.float32)   # time-major [T, B, I]
    y_f = y_b = None
    for lp in lstm_params:
        y_f, y_b = _run_bidir_layer(xt, lp)
        xt = jnp.concatenate([y_f, y_b], axis=-1)           # [T, B, 2H] -> next layer
    # h of last layer: forward final state = y_f[T-1]; backward final state = y_b[0].
    h_cat = jnp.concatenate([y_f[-1], y_b[0]], axis=-1)     # [B, 2H]
    return _linear_head(h_cat, w_lin, b_lin)


# ----------------------------------------------------------------------------
# Parameter init (PyTorch nn.LSTM / nn.Linear style) and pure-JAX reference
# ----------------------------------------------------------------------------
def init_lstm_params(key, input_dim, hidden_dim, num_layers, target_size):
    params = []
    bound = 1.0 / jnp.sqrt(hidden_dim)
    in_dim = input_dim
    for _ in range(num_layers):
        layer = {}
        for d in ("f", "b"):
            key, k1, k2, k3, k4 = jax.random.split(key, 5)
            layer[f"w_ih_{d}"] = jax.random.uniform(
                k1, (in_dim, 4 * hidden_dim), jnp.float32, -bound, bound)
            layer[f"w_hh_{d}"] = jax.random.uniform(
                k2, (hidden_dim, 4 * hidden_dim), jnp.float32, -bound, bound)
            b_ih = jax.random.uniform(k3, (4 * hidden_dim,), jnp.float32, -bound, bound)
            b_hh = jax.random.uniform(k4, (4 * hidden_dim,), jnp.float32, -bound, bound)
            layer[f"b_{d}"] = (b_ih + b_hh).reshape(1, -1)
        params.append(layer)
        in_dim = 2 * hidden_dim
    key, kw, kb = jax.random.split(key, 3)
    lin_bound = 1.0 / jnp.sqrt(2 * hidden_dim)
    w_lin = jax.random.uniform(kw, (2 * hidden_dim, target_size),
                               jnp.float32, -lin_bound, lin_bound)
    b_lin = jax.random.uniform(kb, (target_size,),
                               jnp.float32, -lin_bound, lin_bound).reshape(1, -1)
    return params, w_lin, b_lin


def _lstm_dir_reference(seq, w_ih, w_hh, b):
    T, B, _ = seq.shape
    H = w_hh.shape[0]
    h = jnp.zeros((B, H), jnp.float32)
    c = jnp.zeros((B, H), jnp.float32)
    hs = []
    for t in range(T):
        gates = seq[t] @ w_ih + h @ w_hh + b
        i = jax.nn.sigmoid(gates[:, :H])
        f = jax.nn.sigmoid(gates[:, H:2 * H])
        g = jnp.tanh(gates[:, 2 * H:3 * H])
        o = jax.nn.sigmoid(gates[:, 3 * H:])
        c = f * c + i * g
        h = o * jnp.tanh(c)
        hs.append(h)
    return jnp.stack(hs, axis=0)   # [T, B, H]


def lstm_model_reference(x, lstm_params, w_lin, b_lin):
    seq = jnp.transpose(x, (1, 0, 2)).astype(jnp.float32)   # [T, B, I]
    h_f_last = h_b_last = None
    for lp in lstm_params:
        hs_f = _lstm_dir_reference(seq, lp["w_ih_f"], lp["w_hh_f"], lp["b_f"])
        hs_b_rev = _lstm_dir_reference(seq[::-1], lp["w_ih_b"], lp["w_hh_b"], lp["b_b"])
        hs_b = hs_b_rev[::-1]
        seq = jnp.concatenate([hs_f, hs_b], axis=-1)
        h_f_last, h_b_last = hs_f[-1], hs_b_rev[-1]
    h_cat = jnp.concatenate([h_f_last, h_b_last], axis=-1)
    return h_cat @ w_lin + b_lin


# ----------------------------------------------------------------------------
# Main
# ----------------------------------------------------------------------------
if __name__ == "__main__":
    parameters = {"layer_dim": 2, "hidden_dim": 32, "dropout": 0.0}
    input_dim, target_size = 3, 1
    batch, seq_len = 2, 8

    key = jax.random.PRNGKey(0)
    key, kx = jax.random.split(key)
    x = jax.random.normal(kx, (batch, seq_len, input_dim), jnp.float32)

    lstm_params, w_lin, b_lin = init_lstm_params(
        key, input_dim, int(parameters["hidden_dim"]),
        int(parameters["layer_dim"]), target_size)

    y = lstm_model_forward(x, lstm_params, w_lin, b_lin)
    y = jax.block_until_ready(y)

    y_ref = lstm_model_reference(x, lstm_params, w_lin, b_lin)
    assert y.shape == (batch, target_size)
    assert jnp.allclose(y, y_ref, atol=1e-4, rtol=1e-4), "mismatch vs reference"

    print("KERNEL_OK")
</pallas_src>

<mosaic_0001>
module attributes {stable_mosaic.version = 11 : i64} {
  func.func @_bidir_lstm_layer_kernel(%arg0: i32, %arg1: memref<1x2x3xf32, #tpu.memory_space<vmem>>, %arg2: memref<1x2x3xf32, #tpu.memory_space<vmem>>, %arg3: memref<3x128xf32, #tpu.memory_space<vmem>>, %arg4: memref<32x128xf32, #tpu.memory_space<vmem>>, %arg5: memref<1x128xf32, #tpu.memory_space<vmem>>, %arg6: memref<3x128xf32, #tpu.memory_space<vmem>>, %arg7: memref<32x128xf32, #tpu.memory_space<vmem>>, %arg8: memref<1x128xf32, #tpu.memory_space<vmem>>, %arg9: memref<1x2x32xf32, #tpu.memory_space<vmem>>, %arg10: memref<1x2x32xf32, #tpu.memory_space<vmem>>, %arg11: memref<2x32xf32, #tpu.memory_space<vmem>>, %arg12: memref<2x32xf32, #tpu.memory_space<vmem>>, %arg13: memref<2x32xf32, #tpu.memory_space<vmem>>, %arg14: memref<2x32xf32, #tpu.memory_space<vmem>>) attributes {dimension_semantics = [#tpu.dimension_semantics<arbitrary>], iteration_bounds = array<i64: 8>, scalar_prefetch = 0 : i64, scratch_operands = 4 : i64, tpu.core_type = #tpu.core_type<tc>, window_params = [{transform_indices = @transform_0, window_bounds = array<i64: 1, 2, 3>}, {transform_indices = @transform_1, window_bounds = array<i64: 1, 2, 3>}, {pipeline_mode = #tpu.pipeline_mode<synchronous>, transform_indices = @transform_2, window_bounds = array<i64: 3, 128>}, {pipeline_mode = #tpu.pipeline_mode<synchronous>, transform_indices = @transform_3, window_bounds = array<i64: 32, 128>}, {pipeline_mode = #tpu.pipeline_mode<synchronous>, transform_indices = @transform_4, window_bounds = array<i64: 1, 128>}, {pipeline_mode = #tpu.pipeline_mode<synchronous>, transform_indices = @transform_5, window_bounds = array<i64: 3, 128>}, {pipeline_mode = #tpu.pipeline_mode<synchronous>, transform_indices = @transform_6, window_bounds = array<i64: 32, 128>}, {pipeline_mode = #tpu.pipeline_mode<synchronous>, transform_indices = @transform_7, window_bounds = array<i64: 1, 128>}, {transform_indices = @transform_8, window_bounds = array<i64: 1, 2, 32>}, {transform_indices = @transform_9, window_bounds = array<i64: 1, 2, 32>}]} {
    %c0_i32 = arith.constant 0 : i32
    %0 = arith.cmpi eq, %arg0, %c0_i32 : i32
    %1 = arith.extui %0 : i1 to i32
    %c0_i32_0 = arith.constant 0 : i32
    %2 = arith.cmpi ne, %1, %c0_i32_0 : i32
    scf.if %2 {
      %cst_49 = arith.constant 0.000000e+00 : f32
      %87 = vector.broadcast %cst_49 : f32 to vector<2x32xf32>
      %c0_50 = arith.constant 0 : index
      %c0_51 = arith.constant 0 : index
      %88 = vector.load %arg11[%c0_50, %c0_51] : memref<2x32xf32, #tpu.memory_space<vmem>>, vector<2x32xf32>
      tpu.vector_store %arg11[%c0_50, %c0_51], %87 {strides = array<i32>} : memref<2x32xf32, #tpu.memory_space<vmem>>, vector<2x32xf32>,
      %cst_52 = arith.constant 0.000000e+00 : f32
      %89 = vector.broadcast %cst_52 : f32 to vector<2x32xf32>
      %c0_53 = arith.constant 0 : index
      %c0_54 = arith.constant 0 : index
      %90 = vector.load %arg12[%c0_53, %c0_54] : memref<2x32xf32, #tpu.memory_space<vmem>>, vector<2x32xf32>
      tpu.vector_store %arg12[%c0_53, %c0_54], %89 {strides = array<i32>} : memref<2x32xf32, #tpu.memory_space<vmem>>, vector<2x32xf32>,
      %cst_55 = arith.constant 0.000000e+00 : f32
      %91 = vector.broadcast %cst_55 : f32 to vector<2x32xf32>
      %c0_56 = arith.constant 0 : index
      %c0_57 = arith.constant 0 : index
      %92 = vector.load %arg13[%c0_56, %c0_57] : memref<2x32xf32, #tpu.memory_space<vmem>>, vector<2x32xf32>
      tpu.vector_store %arg13[%c0_56, %c0_57], %91 {strides = array<i32>} : memref<2x32xf32, #tpu.memory_space<vmem>>, vector<2x32xf32>,
      %cst_58 = arith.constant 0.000000e+00 : f32
      %93 = vector.broadcast %cst_58 : f32 to vector<2x32xf32>
      %c0_59 = arith.constant 0 : index
      %c0_60 = arith.constant 0 : index
      %94 = vector.load %arg14[%c0_59, %c0_60] : memref<2x32xf32, #tpu.memory_space<vmem>>, vector<2x32xf32>
      tpu.vector_store %arg14[%c0_59, %c0_60], %93 {strides = array<i32>} : memref<2x32xf32, #tpu.memory_space<vmem>>, vector<2x32xf32>,
    } else {
    }
    %c0 = arith.constant 0 : index
    %c0_1 = arith.constant 0 : index
    %c0_2 = arith.constant 0 : index
    %3 = vector.load %arg1[%c0, %c0_1, %c0_2] : memref<1x2x3xf32, #tpu.memory_space<vmem>>, vector<1x2x3xf32>
    %4 = vector.shape_cast %3 : vector<1x2x3xf32> to vector<2x3xf32>
    %c0_3 = arith.constant 0 : index
    %c0_4 = arith.constant 0 : index
    %5 = vector.load %arg3[%c0_3, %c0_4] : memref<3x128xf32, #tpu.memory_space<vmem>>, vector<3x128xf32>
    %c0_5 = arith.constant 0 : index
    %c0_6 = arith.constant 0 : index
    %6 = vector.load %arg4[%c0_5, %c0_6] : memref<32x128xf32, #tpu.memory_space<vmem>>, vector<32x128xf32>
    %c0_7 = arith.constant 0 : index
    %c0_8 = arith.constant 0 : index
    %7 = vector.load %arg5[%c0_7, %c0_8] : memref<1x128xf32, #tpu.memory_space<vmem>>, vector<1x128xf32>
    %cst = arith.constant dense<0.000000e+00> : vector<2x128xf32>
    %8 = tpu.matmul %4, %5, %cst {dimension_numbers = #tpu.dot_dimension_numbers<[1], [0], [0], [1], [0, 0, 1, 1], [], []>} : vector<2x3xf32>, vector<3x128xf32>, vector<2x128xf32> -> vector<2x128xf32>
    %c0_9 = arith.constant 0 : index
    %c0_10 = arith.constant 0 : index
    %9 = vector.load %arg11[%c0_9, %c0_10] : memref<2x32xf32, #tpu.memory_space<vmem>>, vector<2x32xf32>
    %cst_11 = arith.constant dense<0.000000e+00> : vector<2x128xf32>
    %10 = tpu.matmul %9, %6, %cst_11 {dimension_numbers = #tpu.dot_dimension_numbers<[1], [0], [0], [1], [0, 0, 1, 1], [], []>} : vector<2x32xf32>, vector<32x128xf32>, vector<2x128xf32> -> vector<2x128xf32>
    %11 = arith.addf %8, %10 : vector<2x128xf32>
    %12 = vector.broadcast %7 : vector<1x128xf32> to vector<2x128xf32>
    %13 = arith.addf %11, %12 : vector<2x128xf32>
    %14 = vector.extract_strided_slice %13 {offsets = [0, 0], sizes = [2, 32], strides = [1, 1]} : vector<2x128xf32> to vector<2x32xf32>
    %15 = arith.negf %14 : vector<2x32xf32>
    %16 = math.exp %15 : vector<2x32xf32>
    %cst_12 = arith.constant 1.000000e+00 : f32
    %17 = vector.broadcast %cst_12 : f32 to vector<2x32xf32>
    %18 = arith.addf %17, %16 : vector<2x32xf32>
    %19 = arith.divf %17, %18 : vector<2x32xf32>
    %20 = vector.extract_strided_slice %13 {offsets = [0, 32], sizes = [2, 32], strides = [1, 1]} : vector<2x128xf32> to vector<2x32xf32>
    %21 = arith.negf %20 : vector<2x32xf32>
    %22 = math.exp %21 : vector<2x32xf32>
    %cst_13 = arith.constant 1.000000e+00 : f32
    %23 = vector.broadcast %cst_13 : f32 to vector<2x32xf32>
    %24 = arith.addf %23, %22 : vector<2x32xf32>
    %25 = arith.divf %23, %24 : vector<2x32xf32>
    %26 = vector.extract_strided_slice %13 {offsets = [0, 64], sizes = [2, 32], strides = [1, 1]} : vector<2x128xf32> to vector<2x32xf32>
    %27 = math.tanh %26 : vector<2x32xf32>
    %28 = vector.extract_strided_slice %13 {offsets = [0, 96], sizes = [2, 32], strides = [1, 1]} : vector<2x128xf32> to vector<2x32xf32>
    %29 = arith.negf %28 : vector<2x32xf32>
    %30 = math.exp %29 : vector<2x32xf32>
    %cst_14 = arith.constant 1.000000e+00 : f32
    %31 = vector.broadcast %cst_14 : f32 to vector<2x32xf32>
    %32 = arith.addf %31, %30 : vector<2x32xf32>
    %33 = arith.divf %31, %32 : vector<2x32xf32>
    %c0_15 = arith.constant 0 : index
    %c0_16 = arith.constant 0 : index
    %34 = vector.load %arg12[%c0_15, %c0_16] : memref<2x32xf32, #tpu.memory_space<vmem>>, vector<2x32xf32>
    %35 = arith.mulf %25, %34 : vector<2x32xf32>
    %36 = arith.mulf %19, %27 : vector<2x32xf32>
    %37 = arith.addf %35, %36 : vector<2x32xf32>
    %38 = math.tanh %37 : vector<2x32xf32>
    %39 = arith.mulf %33, %38 : vector<2x32xf32>
    %c0_17 = arith.constant 0 : index
    %c0_18 = arith.constant 0 : index
    %40 = vector.load %arg12[%c0_17, %c0_18] : memref<2x32xf32, #tpu.memory_space<vmem>>, vector<2x32xf32>
    tpu.vector_store %arg12[%c0_17, %c0_18], %37 {strides = array<i32>} : memref<2x32xf32, #tpu.memory_space<vmem>>, vector<2x32xf32>,
    %c0_19 = arith.constant 0 : index
    %c0_20 = arith.constant 0 : index
    %41 = vector.load %arg11[%c0_19, %c0_20] : memref<2x32xf32, #tpu.memory_space<vmem>>, vector<2x32xf32>
    tpu.vector_store %arg11[%c0_19, %c0_20], %39 {strides = array<i32>} : memref<2x32xf32, #tpu.memory_space<vmem>>, vector<2x32xf32>,
    %c0_21 = arith.constant 0 : index
    %c0_22 = arith.constant 0 : index
    %c0_23 = arith.constant 0 : index
    %42 = vector.load %arg2[%c0_21, %c0_22, %c0_23] : memref<1x2x3xf32, #tpu.memory_space<vmem>>, vector<1x2x3xf32>
    %43 = vector.shape_cast %42 : vector<1x2x3xf32> to vector<2x3xf32>
    %c0_24 = arith.constant 0 : index
    %c0_25 = arith.constant 0 : index
    %44 = vector.load %arg6[%c0_24, %c0_25] : memref<3x128xf32, #tpu.memory_space<vmem>>, vector<3x128xf32>
    %c0_26 = arith.constant 0 : index
    %c0_27 = arith.constant 0 : index
    %45 = vector.load %arg7[%c0_26, %c0_27] : memref<32x128xf32, #tpu.memory_space<vmem>>, vector<32x128xf32>
    %c0_28 = arith.constant 0 : index
    %c0_29 = arith.constant 0 : index
    %46 = vector.load %arg8[%c0_28, %c0_29] : memref<1x128xf32, #tpu.memory_space<vmem>>, vector<1x128xf32>
    %cst_30 = arith.constant dense<0.000000e+00> : vector<2x128xf32>
    %47 = tpu.matmul %43, %44, %cst_30 {dimension_numbers = #tpu.dot_dimension_numbers<[1], [0], [0], [1], [0, 0, 1, 1], [], []>} : vector<2x3xf32>, vector<3x128xf32>, vector<2x128xf32> -> vector<2x128xf32>
    %c0_31 = arith.constant 0 : index
    %c0_32 = arith.constant 0 : index
    %48 = vector.load %arg13[%c0_31, %c0_32] : memref<2x32xf32, #tpu.memory_space<vmem>>, vector<2x32xf32>
    %cst_33 = arith.constant dense<0.000000e+00> : vector<2x128xf32>
    %49 = tpu.matmul %48, %45, %cst_33 {dimension_numbers = #tpu.dot_dimension_numbers<[1], [0], [0], [1], [0, 0, 1, 1], [], []>} : vector<2x32xf32>, vector<32x128xf32>, vector<2x128xf32> -> vector<2x128xf32>
    %50 = arith.addf %47, %49 : vector<2x128xf32>
    %51 = vector.broadcast %46 : vector<1x128xf32> to vector<2x128xf32>
    %52 = arith.addf %50, %51 : vector<2x128xf32>
    %53 = vector.extract_strided_slice %52 {offsets = [0, 0], sizes = [2, 32], strides = [1, 1]} : vector<2x128xf32> to vector<2x32xf32>
    %54 = arith.negf %53 : vector<2x32xf32>
    %55 = math.exp %54 : vector<2x32xf32>
    %cst_34 = arith.constant 1.000000e+00 : f32
    %56 = vector.broadcast %cst_34 : f32 to vector<2x32xf32>
    %57 = arith.addf %56, %55 : vector<2x32xf32>
    %58 = arith.divf %56, %57 : vector<2x32xf32>
    %59 = vector.extract_strided_slice %52 {offsets = [0, 32], sizes = [2, 32], strides = [1, 1]} : vector<2x128xf32> to vector<2x32xf32>
    %60 = arith.negf %59 : vector<2x32xf32>
    %61 = math.exp %60 : vector<2x32xf32>
    %cst_35 = arith.constant 1.000000e+00 : f32
    %62 = vector.broadcast %cst_35 : f32 to vector<2x32xf32>
    %63 = arith.addf %62, %61 : vector<2x32xf32>
    %64 = arith.divf %62, %63 : vector<2x32xf32>
    %65 = vector.extract_strided_slice %52 {offsets = [0, 64], sizes = [2, 32], strides = [1, 1]} : vector<2x128xf32> to vector<2x32xf32>
    %66 = math.tanh %65 : vector<2x32xf32>
    %67 = vector.extract_strided_slice %52 {offsets = [0, 96], sizes = [2, 32], strides = [1, 1]} : vector<2x128xf32> to vector<2x32xf32>
    %68 = arith.negf %67 : vector<2x32xf32>
    %69 = math.exp %68 : vector<2x32xf32>
    %cst_36 = arith.constant 1.000000e+00 : f32
    %70 = vector.broadcast %cst_36 : f32 to vector<2x32xf32>
    %71 = arith.addf %70, %69 : vector<2x32xf32>
    %72 = arith.divf %70, %71 : vector<2x32xf32>
    %c0_37 = arith.constant 0 : index
    %c0_38 = arith.constant 0 : index
    %73 = vector.load %arg14[%c0_37, %c0_38] : memref<2x32xf32, #tpu.memory_space<vmem>>, vector<2x32xf32>
    %74 = arith.mulf %64, %73 : vector<2x32xf32>
    %75 = arith.mulf %58, %66 : vector<2x32xf32>
    %76 = arith.addf %74, %75 : vector<2x32xf32>
    %77 = math.tanh %76 : vector<2x32xf32>
    %78 = arith.mulf %72, %77 : vector<2x32xf32>
    %c0_39 = arith.constant 0 : index
    %c0_40 = arith.constant 0 : index
    %79 = vector.load %arg14[%c0_39, %c0_40] : memref<2x32xf32, #tpu.memory_space<vmem>>, vector<2x32xf32>
    tpu.vector_store %arg14[%c0_39, %c0_40], %76 {strides = array<i32>} : memref<2x32xf32, #tpu.memory_space<vmem>>, vector<2x32xf32>,
    %c0_41 = arith.constant 0 : index
    %c0_42 = arith.constant 0 : index
    %80 = vector.load %arg13[%c0_41, %c0_42] : memref<2x32xf32, #tpu.memory_space<vmem>>, vector<2x32xf32>
    tpu.vector_store %arg13[%c0_41, %c0_42], %78 {strides = array<i32>} : memref<2x32xf32, #tpu.memory_space<vmem>>, vector<2x32xf32>,
    %c0_43 = arith.constant 0 : index
    %c0_44 = arith.constant 0 : index
    %c0_45 = arith.constant 0 : index
    %81 = vector.load %arg9[%c0_43, %c0_44, %c0_45] : memref<1x2x32xf32, #tpu.memory_space<vmem>>, vector<1x2x32xf32>
    %82 = vector.shape_cast %81 : vector<1x2x32xf32> to vector<2x32xf32>
    %83 = vector.shape_cast %39 : vector<2x32xf32> to vector<1x2x32xf32>
    tpu.vector_store %arg9[%c0_43, %c0_44, %c0_45], %83 {strides = array<i32>} : memref<1x2x32xf32, #tpu.memory_space<vmem>>, vector<1x2x32xf32>,
    %c0_46 = arith.constant 0 : index
    %c0_47 = arith.constant 0 : index
    %c0_48 = arith.constant 0 : index
    %84 = vector.load %arg10[%c0_46, %c0_47, %c0_48] : memref<1x2x32xf32, #tpu.memory_space<vmem>>, vector<1x2x32xf32>
    %85 = vector.shape_cast %84 : vector<1x2x32xf32> to vector<2x32xf32>
    %86 = vector.shape_cast %78 : vector<2x32xf32> to vector<1x2x32xf32>
    tpu.vector_store %arg10[%c0_46, %c0_47, %c0_48], %86 {strides = array<i32>} : memref<1x2x32xf32, #tpu.memory_space<vmem>>, vector<1x2x32xf32>,
    return
  }
  func.func @transform_0(%arg0: i32) -> (i32, i32, i32) {
    %c0_i32 = arith.constant 0 : i32
    %c0_i32_0 = arith.constant 0 : i32
    %c0_i32_1 = arith.constant 0 : i32
    return %arg0, %c0_i32, %c0_i32_0 : i32, i32, i32
  }
  func.func @transform_1(%arg0: i32) -> (i32, i32, i32) {
    %c7_i32 = arith.constant 7 : i32
    %0 = arith.subi %c7_i32, %arg0 : i32
    %c0_i32 = arith.constant 0 : i32
    %c0_i32_0 = arith.constant 0 : i32
    %c0_i32_1 = arith.constant 0 : i32
    return %0, %c0_i32, %c0_i32_0 : i32, i32, i32
  }
  func.func @transform_2(%arg0: i32) -> (i32, i32) {
    %c0_i32 = arith.constant 0 : i32
    %c0_i32_0 = arith.constant 0 : i32
    %c0_i32_1 = arith.constant 0 : i32
    return %c0_i32, %c0_i32_0 : i32, i32
  }
  func.func @transform_3(%arg0: i32) -> (i32, i32) {
    %c0_i32 = arith.constant 0 : i32
    %c0_i32_0 = arith.constant 0 : i32
    %c0_i32_1 = arith.constant 0 : i32
    return %c0_i32, %c0_i32_0 : i32, i32
  }
  func.func @transform_4(%arg0: i32) -> (i32, i32) {
    %c0_i32 = arith.constant 0 : i32
    %c0_i32_0 = arith.constant 0 : i32
    %c0_i32_1 = arith.constant 0 : i32
    return %c0_i32, %c0_i32_0 : i32, i32
  }
  func.func @transform_5(%arg0: i32) -> (i32, i32) {
    %c0_i32 = arith.constant 0 : i32
    %c0_i32_0 = arith.constant 0 : i32
    %c0_i32_1 = arith.constant 0 : i32
    return %c0_i32, %c0_i32_0 : i32, i32
  }
  func.func @transform_6(%arg0: i32) -> (i32, i32) {
    %c0_i32 = arith.constant 0 : i32
    %c0_i32_0 = arith.constant 0 : i32
    %c0_i32_1 = arith.constant 0 : i32
    return %c0_i32, %c0_i32_0 : i32, i32
  }
  func.func @transform_7(%arg0: i32) -> (i32, i32) {
    %c0_i32 = arith.constant 0 : i32
    %c0_i32_0 = arith.constant 0 : i32
    %c0_i32_1 = arith.constant 0 : i32
    return %c0_i32, %c0_i32_0 : i32, i32
  }
  func.func @transform_8(%arg0: i32) -> (i32, i32, i32) {
    %c0_i32 = arith.constant 0 : i32
    %c0_i32_0 = arith.constant 0 : i32
    %c0_i32_1 = arith.constant 0 : i32
    return %arg0, %c0_i32, %c0_i32_0 : i32, i32, i32
  }
  func.func @transform_9(%arg0: i32) -> (i32, i32, i32) {
    %c7_i32 = arith.constant 7 : i32
    %0 = arith.subi %c7_i32, %arg0 : i32
    %c0_i32 = arith.constant 0 : i32
    %c0_i32_0 = arith.constant 0 : i32
    %c0_i32_1 = arith.constant 0 : i32
    return %0, %c0_i32, %c0_i32_0 : i32, i32, i32
  }
}

</mosaic_0001>

<bundles_post_ra>
// kernel: tpu_custom_call.1
= control target key start
LH: loop header
LB: loop body
LE: loop exit
PB: predicated region body
PF: predicated region fallthrough
CT: control target
= control target key end

     0   :  { %s1627_s0 = inlined_call_operand.vmem [shape: f32[8,2,3], index: 0, kind: input, shape index: {}]   ;;  %s1628_s1 = inlined_call_operand.vmem [shape: f32[8,2,3], index: 1, kind: input, shape index: {}]   ;;  %s1629_s2 = inlined_call_operand.vmem [shape: f32[3,128], index: 2, kind: input, shape index: {}]   ;;  %s1630_s3 = inlined_call_operand.vmem [shape: f32[32,128], index: 3, kind: input, shape index: {}]   ;;  %s1631_s4 = inlined_call_operand.vmem [shape: f32[1,128], index: 4, kind: input, shape index: {}]   ;;  %s1632_s5 = inlined_call_operand.vmem [shape: f32[3,128], index: 5, kind: input, shape index: {}]   ;;  %s1633_s6 = inlined_call_operand.hbm [shape: f32[32,128], index: 6, kind: input, shape index: {}]   ;;  %s1634_s7 = inlined_call_operand.vmem [shape: f32[1,128], index: 7, kind: input, shape index: {}]   ;;  %s1635_s8 = inlined_call_operand.hbm [shape: f32[8,2,32], index: 8, kind: output, shape index: {0}]   ;;  %s1636_s9 = inlined_call_operand.hbm [shape: f32[8,2,32], index: 9, kind: output, shape index: {1}]  }
   0x1   :  { %1648 = sst [smem:[#allocation23_spill]] %s1633_s6 }
   0x2   :  { %15 = vsyncpa [#allocation7], 0 }
   0x3   :  { %16 = vsyncpa [#allocation8], 0 }
   0x4   :  { %18 = vsyncpa [#allocation8 + $0x1], 0 }
   0x5   :  { %19 = vsyncpa [#allocation11], 0 }
   0x6   :  { %21 = vsyncpa [#allocation11 + $0x1], 0  ;;  %s1333_s30 = smov 0   ;;  %s1335_s10 = smov 0  }
   0x7   :  { %s1337_s11 = smov 0   ;;  %s1339_s12 = smov 0  }
   0x8   :  { %s1341_s13 = smov 0   ;;  %s1343_s14 = smov 0  }
   0x9   :  { %s1345_s15 = smov 0  }
   0xa LB: > { %1649 = sst [smem:[#allocation15_spill]] %s1246_s30  ;;  %s1369_s16 = sadd.s32 4294967295, %s1270_s15   ;;  %s1270_s15 = sphi %s1345_s15, %s1674_s15   ;;  %s1266_s14 = sphi %s1343_s14, %s1678_s14   ;;  %s1262_s13 = sphi %s1341_s13, %s1682_s13   ;;  %s1258_s12 = sphi %s1339_s12, %s1681_s12   ;;  %s1254_s11 = sphi %s1337_s11, %s1676_s11   ;;  %s1250_s10 = sphi %s1335_s10, %s1680_s10   ;;  %s1246_s30 = sphi %s1333_s30, %s1679_s30  }
   0xb   : > { %1650 = sst [smem:[#allocation16_spill]] %s1254_s11  ;;  %s950_s17 = sadd.s32 4294967294, %s1270_s15  }
   0xc   : > { %1651 = sst [smem:[#allocation17_spill]] %s1266_s14  ;;  %s1373_s18 = sadd.s32 1, %s1270_s15  }
   0xd   : > { %1652 = sst [smem:[#allocation18_spill]] %s1373_s18  ;;  %s214_s19 = sadd.s32 1, %s1266_s14 }
   0xe   : > { %s211_s20 = ssub.s32 %s1270_s15, %s1373_s18  ;;  %p224_p0 = scmp.ne.s32.totalorder %s1266_s14, %s1262_s13 }
   0xf   : > { %p212_p1 = scmp.eq.s32.totalorder %s211_s20, 0  ;;  %p225_p2 = scmp.eq.s32.totalorder %s1369_s16, 7 }
  0x10   : > { %p230_p3 = scmp.ne.s32.totalorder %s1262_s13, %s1258_s12  ;;  %p1383_p4 = scmp.eq.s32.totalorder %s950_s17, 7 }
  0x11   : > { %s1388_s22 = scalar_select %p212_p1, %s1266_s14, %s214_s19  }
  0x12   : > { %p1392_p5 = por %p225_p2, %p224_p0  ;;  %p1398_p6 = por %p1383_p4, %p230_p3 }
  0x13   : > { %1654 = sst [smem:[#allocation19_spill]] %s1388_s22  ;;  %s237_s25 = ssub.s32 7, %s1270_s15 }
  0x14   : > { %s1656_s24 = scalar_select %p1398_p6, 1, 0 }
  0x15   : > { %s238_s26 = ssub.s32 7, %s1373_s18  ;;  %s242_s28 = sadd.s32 1, %s1254_s11 }
  0x16   : > { %1657 = sst [smem:[#allocation20_spill]] %s1656_s24  ;;  %s239_s27 = ssub.s32 %s237_s25, %s238_s26 }
  0x17   : > { %p240_p7 = scmp.eq.s32.totalorder %s239_s27, 0  ;;  %p252_p8 = scmp.ne.s32.totalorder %s1254_s11, %s1250_s10 }
  0x18   : > { %p258_p9 = scmp.ne.s32.totalorder %s1250_s10, %s1246_s30  ;;  %p951_p10 = scmp.ge.s32.totalorder %s1270_s15, 1 }
  0x19   : > { %s1411_s29 = scalar_select %p240_p7, %s1254_s11, %s242_s28  }
  0x1a   : > { %p1415_p11 = por %p252_p8, %p225_p2  ;;  %p1421_p12 = por %p258_p9, %p1383_p4 }
  0x1b   : > { %1658 = sst [smem:[#allocation21_spill]] %s1411_s29  ;;  %p266_p13 = scmp.lt.s32.totalorder %s1270_s15, 9 }
  0x1c   : > { %s1659_s17 = scalar_select %p1415_p11, 1, 0 }
  0x1d   : > { %s1660_s19 = scalar_select %p1421_p12, 1, 0 }
  0x1e   : > { %p1042_p1 = scmp.eq.s32.totalorder %s1369_s16, 0  ;;  %p1428_p3 = pnand %p951_p10, %p266_p13 }
  0x1f   : > { %1661 = sst [smem:[#allocation22_spill]] %s1660_s19  ;;  %s1272_s25 = smov [#allocation6]  }
  0x20   : > { %s290_s26 = sshll.u32 %s1272_s25, 4  ;;  %p1031_p2 = pneg %p1428_p3  ;;  %s291_s26 = int_to_ptr.vmem [resolvable:$true] %s290_s26 }
  0x21   : > { %s1137_s21 = scalar_lea.vmem %s291_s26, 512  ;;  %p1145_p6 = scmp.lt.s32.totalorder %s291_s26, %s291_s26 }
  0x22   : > { %p1032_p7 = pnand %p1042_p1, %p1031_p2  ;;  %p1138_p4 = scmp.ne.s32.totalorder %s291_s26, %s1137_s21 }
  0x23   : > { %p1146_p0 = scmp.lt.s32.totalorder %s1137_s21, %s1137_s21 }
  0x24   : > { %p1128_p8 = pneg %p1032_p7 }
  0x25   : > { %p1147_p11 = por %p1146_p0, %p1145_p6 }
  0x26   : > { %p1140_p9 = pnand %p1138_p4, %p1128_p8 }
  0x28   : > { %p1141_p12 = pneg %p1140_p9 }
  0x2a   : > { %p1148_p10 = pnand %p1147_p11, %p1141_p12 }
  0x2c   : > { %1151 = shalt.err (!%p1148_p10)
}
  0x2d   : > { %s1273_s27 = smov 128   ;;  %s1274_s28 = smov 8  }
  0x2e   : > { %s1663_s6 = sld [smem:[#allocation23_spill]] }
  0x30   : > { %325 = sbr.rel (%p1428_p3) target bundleno = 811 (0x32b), region = 52 }
  0x34   : > { %1034 = dma.hbm_to_vmem [thread:$0]  (!%p1032_p7), %s1663_s6, 512, %s291_s26, [#allocation7], %s1273_s27, %s1273_s27, %s1274_s28  }
  0x35   : > { %1233 = dma.done.wait (%p1042_p1), [#allocation7], 512  }
  0x36   : > { %1235 = vsyncadd (%p1042_p1), [#allocation7], 4294966784  ;;  %s1640_s25 = sand.u32 1, %s1262_s13   ;;  %s1644_s21 = sand.u32 1, %s1250_s10  }
  0x37   : > { %s1449_s14 = sshll.u32 %s1640_s25, 1  ;;  %s1453_s22 = sshll.u32 %s1644_s21, 1 }
  0x38   : > { %p370_p6 = scmp.lt.s32.totalorder %s1369_s16, 7  ;;  %s1457_s20 = ssub.s32 7, %s1369_s16 }
  0x39   : > { %p375_p11 = scmp.lt.s32.totalorder %s1457_s20, 7  ;;  %s362_s30 = scalar_lea.vmem [#allocation9], %s1449_s14 }
  0x3a   : > { %s371_s26 = scalar_select %p370_p6, %s1369_s16, 7 }
  0x3b   : > { %s376_s27 = scalar_select %p375_p11, %s1457_s20, 7 }
  0x3c   : > { %s958_s28 = sshll.u32 %s371_s26, 1  ;;  %s1647_s24 = scalar_lea.vmem [#allocation10], %s1453_s22 }
  0x3d   : > { %s373_s11 = scalar_lea.vmem %s1627_s0, %s958_s28  ;;  %s959_s25 = sshll.u32 %s376_s27, 1 }
  0x3e   : > { %s1468_s21 = scalar_lea.vmem %s1628_s1, %s959_s25  ;;  %p1664_p12 = scmp.ne.s32.totalorder %s1369_s16, 0 }
  0x40   : > { %384 = sbr.rel (%p1664_p12) target bundleno = 72 (0x48), region = 60 }
  0x45   : > { %vm385_vm0 = vcmask 254976   ;;  %v1275_v0 = vmov 0.0  }
  0x46   : > { %386 = vst.msk [vmem:[#allocation2] sm:$0x3] %vm385_vm0, %v1275_v0  ;;  %387 = vst.msk [vmem:[#allocation3] sm:$0x3] %vm385_vm0, %v1275_v0 }
  0x47   : > { %388 = vst.msk [vmem:[#allocation4] sm:$0x3] %vm385_vm0, %v1275_v0  ;;  %389 = vst.msk [vmem:[#allocation5] sm:$0x3] %vm385_vm0, %v1275_v0 }
  0x48 PF: > { %v395_v1 = vld [vmem:[%s1630_s3 + $0x18] sm:$0xff]  ;;  %v391_v2 = vld [vmem:[%s1629_s2] sm:$0x7]  ;;  %vm476_vm1 = vcmask 1042432   ;;  %v1276_v3 = vmov 0.0   ;;  %v394_v4 = vld [vmem:[%s1630_s3 + $0x10] sm:$0xff] }
  0x49   : > { %991 = vmatprep.subr.mxu0 %v1276_v3  ;;  %1002 = vmatprep.subr.mxu1 %v1276_v3  ;;  %v390_v5 = vld [vmem:[%s373_s11] sm:$0x3]  ;;  %vm472_vm2 = vcmask 23552   ;;  %vm1277_vm3 = vmmov 0   ;;  %v393_v7 = vld [vmem:[%s1630_s3 + $0x8] sm:$0xff]  ;;  %v601_v8 = vld [vmem:[#allocation6 + $0x10] sm:$0xff] }
  0x4a   : > { %992 = vmatpush3.msra.mxu0 %v395_v1  ;;  %1003 = vmatpush3.msk.msra.mxu1 %vm476_vm1, %v391_v2  ;;  %v602_v6 = vld [vmem:[#allocation6 + $0x18] sm:$0xff]  ;;  %vm398_vm4 = vcmask 261120   ;;  %v600_v11 = vld [vmem:[#allocation6 + $0x8] sm:$0xff]  ;;  %v599_v13 = vld [vmem:[#allocation6] sm:$0xff]  ;;  %s1278_s18 = smov 32   ;;  %s1279_s28 = smov 64  }
  0x4b   : > { %993 = vmatprep.subr.mxu0 %v1276_v3  ;;  %1004 = vmatprep.mubr.msk.f32.mxu1 %vm1277_vm3, %v1276_v3  ;;  %v392_v9 = vld [vmem:[%s1630_s3] sm:$0xff]  ;;  %s1280_s6 = smov 96   ;;  %s973_s29 = sshll.u32 %s1369_s16, 5  ;;  %vm590_vm5 = vcmask 254976  }
  0x4c   : > { %994 = vmatpush3.msra.mxu0 %v394_v4  ;;  %1007 = vmatprep.subr.mxu1 %v1276_v3  ;;  %v598_v12 = vld [vmem:[%s1632_s5] sm:$0x7]  ;;  %s821_s11 = sshll.u32 %s362_s30, 4  ;;  %s1525_s19 = scalar_lea.hbm %s1635_s8, %s973_s29  ;;  %s1527_s11 = int_to_ptr.vmem [resolvable:$true] %s821_s11 }
  0x4d   : > { %995 = vmatprep.subr.mxu0 %v1276_v3  ;;  %1005 = vmatmul.mubr.msk.f32.vlgmr.msra.gmra.mxu1 %vm472_vm2, %v390_v5  ;;  %v397_v10 = vld [vmem:[#allocation2] sm:$0x3]  ;;  %v564_v16 = vld [vmem:[#allocation3] sm:$0x3]  ;;  %s974_s25 = sshll.u32 %s1457_s20, 5  ;;  %s1532_s27 = sshll.u32 %s1647_s24, 4  ;;  %s1568_s27 = int_to_ptr.vmem [resolvable:$true] %s1532_s27 }
  0x4e   : > { %1008 = vmatpush3.msra.mxu1 %v602_v6  ;;  %996 = vmatpush3.msra.mxu0 %v393_v7  ;;  %v604_v14 = vld [vmem:[#allocation4] sm:$0x3]  ;;  %v597_v15 = vld [vmem:[%s1468_s21] sm:$0x3]  ;;  %v768_v17 = vld [vmem:[#allocation5] sm:$0x3] }
  0x4f   : > { %1009 = vmatprep.subr.mxu1 %v1276_v3  ;;  %997 = vmatprep.subr.mxu0 %v1276_v3  ;;  %v964_v20 = vld [vmem:[%s1631_s4] ss:$0 sm:$0xff]  ;;  %s1665_s16 = sand.u32 1, %s1262_s13  }
  0x50   : > { %1010 = vmatpush3.msra.mxu1 %v601_v8  ;;  %998 = vmatpush3.msra.mxu0 %v392_v9  ;;  %v969_v26 = vld [vmem:[%s1634_s7] ss:$0 sm:$0xff] }
  0x51   : > { %999 = vmatprep.mubr.msk.f32.mxu0 %vm1277_vm3, %v1276_v3  ;;  %1011 = vmatprep.subr.mxu1 %v1276_v3 }
  0x52   : > { %1000 = vmatmul.mubr.msk.f32.vlgmr.msra.gmra.mxu0 %vm398_vm4, %v397_v10  ;;  %1012 = vmatpush3.msra.mxu1 %v600_v11 }
  0x53   : > { %1018 = vmatprep.subr.mxu0 %v1276_v3  ;;  %1013 = vmatprep.subr.mxu1 %v1276_v3 }
  0x54   : > { %1019 = vmatpush3.msk.msra.mxu0 %vm476_vm1, %v598_v12  ;;  %1014 = vmatpush3.msra.mxu1 %v599_v13 }
  0x55   : > { %1015 = vmatprep.mubr.msk.f32.mxu1 %vm1277_vm3, %v1276_v3  ;;  %1020 = vmatprep.mubr.msk.f32.mxu0 %vm1277_vm3, %v1276_v3 }
  0x56   : > { %1016 = vmatmul.mubr.msk.f32.vlgmr.msra.gmra.mxu1 %vm398_vm4, %v604_v14  ;;  %1021 = vmatmul.mubr.msk.f32.vlgmr.msra.gmra.mxu0 %vm472_vm2, %v597_v15 }
  0x57   : > { %566 = vrot.lane.b32.xlu1 %v564_v16, %s1278_s18 }
  0x5b   : > { %770 = vrot.lane.b32.xlu1 %v768_v17, %s1278_s18 }
  0xc9   : > { %v567_v46 = vpop.permute.xlu1 %566 }
  0xcd   : > { %v771_v48 = vpop.permute.xlu1 %770 }
 0x10d   : > { %v546_v18 = vpop.f32.mrf.mxu1 }
 0x10f   : > { %v1006_v19 = vpop.f32.mrf.mxu1 }
 0x112   : > { %v468_v21 = vpop.f32.mrf.mxu0 }
 0x113   : > { %v547_v22 = vadd.f32 %v546_v18, %v468_v21 }
 0x114   : > { %v1001_v23 = vpop.f32.mrf.mxu0 }
 0x115   : > { %v556_v24 = vadd.f32 %v964_v20, %v547_v22 }
 0x116   : > { %v674_v25 = vpop.f32.mrf.mxu1  ;;  %v750_v27 = vpop.f32.mrf.mxu0 }
 0x117   : > { %1110 = vtanh.f32 %v556_v24  ;;  %v751_v28 = vadd.f32 %v750_v27, %v674_v25  ;;  %v965_v34 = vmul.f32 -1.442695, %v556_v24 }
 0x118   : > { %v1017_v29 = vpop.f32.mrf.mxu1  ;;  %v1022_v30 = vpop.f32.mrf.mxu0 }
 0x119   : > { %v760_v31 = vadd.f32 %v969_v26, %v751_v28 }
 0x11b   : > { %1112 = vtanh.f32 %v760_v31  ;;  %v970_v35 = vmul.f32 -1.442695, %v760_v31 }
 0x11c   : > { %1114 = vpow2.f32 %v965_v34 }
 0x11d   : > { %1116 = vpow2.f32 %v970_v35 }
 0x124   : > { %v1111_v32 = vpop.eup %1110 }
 0x125   : > { %571 = vrot.lane.b32.xlu0 %v1111_v32, %s1279_s28 }
 0x128   : > { %v1113_v33 = vpop.eup %1112 }
 0x129   : > { %775 = vrot.lane.b32.xlu0 %v1113_v33, %s1279_s28  ;;  %v1115_v36 = vpop.eup %1114 }
 0x12a   : > { %v560_v37 = vadd.f32 1.0, %v1115_v36  ;;  %v1117_v38 = vpop.eup %1116 }
 0x12b   : > { %v764_v39 = vadd.f32 1.0, %v1117_v38 }
 0x12c   : > { %1118 = vrcp.f32 %v560_v37 }
 0x12d   : > { %1120 = vrcp.f32 %v764_v39 }
 0x139   : > { %v1119_v40 = vpop.eup %1118 }
 0x13a   : > { %v1121_v43 = vpop.eup %1120  ;;  %v569_v47 = vmul.f32 %v1119_v40, %v567_v46 }
 0x13b   : > { %v773_v51 = vmul.f32 %v1121_v43, %v771_v48 }
 0x197   : > { %v572_v41 = vpop.permute.xlu0 %571 }
 0x198   : > { %v574_v42 = vmul.f32 %v1119_v40, %v572_v41 }
 0x19a   : > { %576 = vrot.lane.b32.xlu0 %v574_v42, %s1278_s18 }
 0x19b   : > { %v776_v44 = vpop.permute.xlu0 %775 }
 0x19c   : > { %v778_v45 = vmul.f32 %v1121_v43, %v776_v44 }
 0x19e   : > { %780 = vrot.lane.b32.xlu1 %v778_v45, %s1278_s18 }
 0x20c   : > { %v577_v49 = vpop.permute.xlu0 %576 }
 0x20d   : > { %v579_v50 = vadd.f32 %v577_v49, %v569_v47 }
 0x20f   : > { %1122 = vtanh.f32 %v579_v50 }
 0x210   : > { %v781_v52 = vpop.permute.xlu1 %780 }
 0x211   : > { %v783_v53 = vadd.f32 %v781_v52, %v773_v51 }
 0x213   : > { %1124 = vtanh.f32 %v783_v53 }
 0x21c   : > { %v1123_v54 = vpop.eup %1122 }
 0x21d   : > { %582 = vrot.lane.b32.xlu0 %v1123_v54, %s1279_s28 }
 0x220   : > { %v1125_v55 = vpop.eup %1124 }
 0x221   : > { %786 = vrot.lane.b32.xlu1 %v1125_v55, %s1279_s28  ;;  %s1152_s28 = scalar_lea.vmem %s1527_s11, 32 }
 0x222   : > { %p1153_p13 = scmp.ne.s32.totalorder %s1527_s11, %s1152_s28 }
 0x224   : > { %p1154_p0 = pnand %p1153_p13, %p1392_p5 }
 0x226   : > { %p1155_p1 = pneg %p1154_p0 }
 0x28f   : > { %v583_v56 = vpop.permute.xlu0 %582 }
 0x290   : > { %v585_v57 = vmul.f32 %v1119_v40, %v583_v56 }
 0x292   : > { %593 = vrot.lane.b32.xlu0 %v585_v57, %s1278_s18 }
 0x293   : > { %v787_v58 = vpop.permute.xlu1 %786 }
 0x294   : > { %v789_v59 = vmul.f32 %v1121_v43, %v787_v58 }
 0x296   : > { %587 = vrot.lane.b32.xlu0 %v579_v50, %s1280_s6  ;;  %796 = vrot.lane.b32.xlu1 %v789_v59, %s1278_s18  ;;  %s803_s18 = scalar_lea.sflag [#allocation8], %s1665_s16 }
 0x29a   : > { %791 = vrot.lane.b32.xlu1 %v783_v53, %s1280_s6  ;;  %s1281_s6 = smov [#allocation9]  }
 0x29b   : > { %s1156_s29 = sshll.u32 %s1281_s6, 4  ;;  %s1157_s29 = int_to_ptr.vmem [resolvable:$false] %s1156_s29 }
 0x29c   : > { %s1158_s26 = scalar_lea.vmem %s1157_s29, 64  ;;  %p1159_p3 = scmp.lt.s32.totalorder %s1527_s11, %s1157_s29 }
 0x29d   : > { %p1160_p2 = scmp.lt.s32.totalorder %s1158_s26, %s1152_s28 }
 0x29f   : > { %p1161_p7 = por %p1160_p2, %p1159_p3 }
 0x2a1   : > { %p1162_p8 = pnand %p1161_p7, %p1155_p1 }
 0x304   : > { %v594_v60 = vpop.permute.xlu0 %593 }
 0x305   : > { %596 = vst.msk [vmem:[#allocation2] sm:$0x3] %vm590_vm5, %v594_v60  ;;  %800 = vst.msk [vmem:[%s362_s30] sm:$0x3] %vm590_vm5, %v594_v60 }
 0x306   : > { %1165 = shalt.err (!%p1162_p8)
}
 0x307   : > { %s1166_s30 = scalar_lea.hbm %s1525_s19, 32  ;;  %s1170_s16 = scalar_lea.hbm %s1635_s8, 256 }
 0x308   : > { %p1167_p4 = scmp.ne.s32.totalorder %s1525_s19, %s1166_s30  ;;  %p1171_p6 = scmp.lt.s32.totalorder %s1525_s19, %s1635_s8 }
 0x309   : > { %p1172_p11 = scmp.lt.s32.totalorder %s1170_s16, %s1166_s30 }
 0x30a   : > { %p1168_p9 = pnand %p1167_p4, %p1392_p5 }
 0x30b   : > { %p1173_p12 = por %p1172_p11, %p1171_p6 }
 0x30c   : > { %p1169_p10 = pneg %p1168_p9 }
 0x30e   : > { %p1174_p13 = pnand %p1173_p12, %p1169_p10 }
 0x310   : > { %1177 = shalt.err (!%p1174_p13)
}
 0x311   : > { %1027 = dma.vmem_to_hbm [thread:$0]  (%p1392_p5), %s1527_s11, 32, %s1525_s19, %s803_s18   ;;  %v588_v61 = vpop.permute.xlu0 %587  ;;  %v797_v62 = vpop.permute.xlu1 %796 }
 0x312   : > { %s1565_s24 = scalar_lea.hbm %s1636_s9, %s974_s25  ;;  %591 = vst.msk [vmem:[#allocation3] sm:$0x3] %vm590_vm5, %v588_v61  ;;  %799 = vst.msk [vmem:[#allocation4] sm:$0x3] %vm590_vm5, %v797_v62  ;;  %s1666_s23 = scalar_lea.vmem [#allocation10], %s1453_s22 }
 0x313   : > { %801 = vst.msk [vmem:[%s1666_s23] sm:$0x3] %vm590_vm5, %v797_v62  ;;  %s1667_s20 = sand.u32 1, %s1250_s10   ;;  %s1178_s19 = scalar_lea.vmem %s1568_s27, 32 }
 0x314   : > { %s808_s11 = scalar_lea.sflag [#allocation11], %s1667_s20  ;;  %p1179_p5 = scmp.ne.s32.totalorder %s1568_s27, %s1178_s19 }
 0x315   : > { %p1668_p0 = scmp.ne.s32.totalorder %s1659_s17, 0  ;;  %s1282_s25 = smov [#allocation10]  }
 0x316   : > { %s1182_s18 = sshll.u32 %s1282_s25, 4  ;;  %s1183_s18 = int_to_ptr.vmem [resolvable:$false] %s1182_s18 }
 0x317   : > { %p1180_p1 = pnand %p1179_p5, %p1668_p0  ;;  %s1184_s26 = scalar_lea.vmem %s1183_s18, 64 }
 0x318   : > { %p1185_p2 = scmp.lt.s32.totalorder %s1568_s27, %s1183_s18  ;;  %p1186_p7 = scmp.lt.s32.totalorder %s1184_s26, %s1178_s19 }
 0x319   : > { %p1181_p3 = pneg %p1180_p1 }
 0x31a   : > { %p1187_p8 = por %p1186_p7, %p1185_p2 }
 0x31c   : > { %p1188_p4 = pnand %p1187_p8, %p1181_p3 }
 0x31e   : > { %1191 = shalt.err (!%p1188_p4)
}
 0x31f   : > { %s1192_s22 = scalar_lea.hbm %s1565_s24, 32  ;;  %s1196_s21 = scalar_lea.hbm %s1636_s9, 256 }
 0x320   : > { %p1193_p9 = scmp.ne.s32.totalorder %s1565_s24, %s1192_s22  ;;  %p1197_p11 = scmp.lt.s32.totalorder %s1565_s24, %s1636_s9 }
 0x321   : > { %p1198_p12 = scmp.lt.s32.totalorder %s1196_s21, %s1192_s22 }
 0x322   : > { %p1194_p10 = pnand %p1193_p9, %p1668_p0 }
 0x323   : > { %p1199_p13 = por %p1198_p12, %p1197_p11 }
 0x324   : > { %p1195_p6 = pneg %p1194_p10 }
 0x326   : > { %p1200_p5 = pnand %p1199_p13, %p1195_p6 }
 0x328   : > { %1203 = shalt.err (!%p1200_p5)
}
 0x329   : > { %1028 = dma.vmem_to_hbm [thread:$0]  (%p1668_p0), %s1568_s27, 32, %s1565_s24, %s808_s11   ;;  %v792_v63 = vpop.permute.xlu1 %791 }
 0x32a   : > { %794 = vst.msk [vmem:[#allocation5] sm:$0x3] %vm590_vm5, %v792_v63 }
 0x32b PF: > { %s1669_s28 = sld [smem:[#allocation20_spill]]  ;;  %p1044_p1 = scmp.ge.s32.totalorder %s1270_s15, 2 }
 0x32c   : > { %s847_s29 = sand.u32 1, %s1258_s12  }
 0x32d   : > { %s848_s23 = scalar_lea.sflag [#allocation8], %s847_s29 }
 0x331   : > { %p1670_p3 = scmp.ne.s32.totalorder %s1669_s28, 0 }
 0x333   : > { %p1036_p2 = pnand %p1044_p1, %p1670_p3 }
 0x335   : > { %p1037_p7 = pneg %p1036_p2 }
 0x337   : > { %1237 = dma.done.wait (%p1037_p7), %s848_s23, 32  }
 0x338   : > { %1239 = vsyncadd (%p1037_p7), %s848_s23, 4294967264  ;;  %s1671_s20 = sld [smem:[#allocation15_spill]] }
 0x339   : > { %s1672_s17 = sld [smem:[#allocation22_spill]] }
 0x33e   : > { %s856_s19 = sand.u32 1, %s1671_s20  }
 0x33f   : > { %p1673_p8 = scmp.ne.s32.totalorder %s1672_s17, 0  ;;  %s857_s27 = scalar_lea.sflag [#allocation11], %s856_s19 }
 0x341   : > { %p1039_p0 = pnand %p1044_p1, %p1673_p8 }
 0x343   : > { %p1040_p4 = pneg %p1039_p0 }
 0x345   : > { %1241 = dma.done.wait (%p1040_p4), %s857_s27, 32  }
 0x346   : > { %1243 = vsyncadd (%p1040_p4), %s857_s27, 4294967264  ;;  %s1674_s15 = sld [smem:[#allocation18_spill]]  ;;  %s1679_s30 = smov %s1250_s10 }
 0x347   : > { %s1675_s24 = sld [smem:[#allocation16_spill]]  ;;  %s1681_s12 = smov %s1262_s13 }
 0x348   : > { %s1676_s11 = sld [smem:[#allocation21_spill]] }
 0x349   : > { %s1677_s25 = sld [smem:[#allocation17_spill]] }
 0x34a   : > { %s1678_s14 = sld [smem:[#allocation19_spill]] }
 0x34c   : > { %p24_p9 = scmp.ge.s32.totalorder %s1674_s15, 10  }
 0x34d   : > { %s1680_s10 = smov %s1675_s24 }
 0x34e   :  { %26 = sbr.rel (!%p24_p9) target bundleno = 10 (0xa), region = 116 }
 0x34f   : > { %s1682_s13 = smov %s1677_s25 }
 0x353   :  { %862 = vsyncpa [#allocation7], 1 }
 0x354   :  { %864 = vsyncpa [#allocation7 + $0x1], 1 }
 0x355   :  { %865 = vsyncpa [#allocation8], 1 }
 0x356   :  { %867 = vsyncpa [#allocation8 + $0x1], 1 }
 0x357   :  { %868 = vsyncpa [#allocation11], 1 }
 0x358   :  { %870 = vsyncpa [#allocation11 + $0x1], 1 }

</bundles_post_ra>
